<compile_context>
chip_gen: v7x
topology: tpu7x:2x2x1
jax: 0.10.0
libtpu: 0.0.40
codegen_flags: <defaults>
</compile_context>

<pallas_src>
import functools

import jax
import jax.numpy as jnp
from jax.experimental import pallas as pl
from jax.experimental.pallas import tpu as pltpu

LN_EPS = 1e-5


def _round_up(n, m):
    return ((n + m - 1) // m) * m


def ffn_kernel(x_ref, w1_ref, b1_ref, w2_ref, b2_ref, gamma_ref, beta_ref, o_ref):
    # Keep an f32 copy of the input tile for the residual + LayerNorm path.
    x_f32 = x_ref[...].astype(jnp.float32)

    # Matmuls run in the weights' dtype (bf16 by default) with f32 accumulation.
    mm_dtype = w1_ref.dtype
    x_mm = x_f32.astype(mm_dtype)

    # Pointwise "conv1" (model_dim -> ffn_dim) + bias + ReLU.
    h = jnp.dot(x_mm, w1_ref[...], preferred_element_type=jnp.float32)
    h = jnp.maximum(h + b1_ref[...], 0.0)

    # Pointwise "conv2" (ffn_dim -> model_dim) + bias.
    y = jnp.dot(h.astype(w2_ref.dtype), w2_ref[...],
                preferred_element_type=jnp.float32)
    y = y + b2_ref[...]

    # dropout(p=0.0) is identity; residual add in f32.
    r = x_f32 + y

    # LayerNorm over model_dim (torch default eps=1e-5), f32 math.
    mean = jnp.mean(r, axis=-1, keepdims=True)
    centered = r - mean
    var = jnp.mean(centered * centered, axis=-1, keepdims=True)
    norm = centered * jax.lax.rsqrt(var + LN_EPS)
    o_ref[...] = (norm * gamma_ref[...] + beta_ref[...]).astype(o_ref.dtype)


def _vmem_limit_bytes(tile_rows, D, F, w_itemsize):
    # Double-buffered weights + double-buffered f32 in/out tiles + hidden tile.
    weights = 2 * (D * F + F * D) * w_itemsize
    io_tiles = 2 * 2 * tile_rows * D * 4
    hidden = 2 * tile_rows * F * 4
    vectors = 4 * (F + 3 * D) * 4
    est = weights + io_tiles + hidden + vectors
    # 2x margin + 4 MiB slack, floored at the 32 MiB default and capped at
    # 64 MiB so it also fits v7x physical VMEM.
    return int(min(max(2 * est + (4 << 20), 32 << 20), 64 << 20))


@functools.partial(jax.jit, static_argnames=("tile_rows", "matmul_dtype"))
def positionwise_ffn(x, w1, b1, w2, b2, gamma, beta, *,
                     tile_rows=256, matmul_dtype=jnp.bfloat16):
    """x: (B, S, D). w1: (D, F), w2: (F, D). Returns (B, S, D)."""
    B, S, D = x.shape
    F = w1.shape[1]
    rows = B * S

    # Effective tile: multiple of 8 sublanes, never bigger than needed.
    tr = min(tile_rows, _round_up(rows, 8))
    rows_padded = _round_up(rows, tr)

    x2d = x.reshape(rows, D)
    if rows_padded != rows:
        x2d = jnp.pad(x2d, ((0, rows_padded - rows), (0, 0)))

    # Cast weights once in the wrapper: halves HBM traffic + VMEM footprint
    # and roughly doubles MXU throughput on v6e/v7x.
    w1_c = w1.astype(matmul_dtype)
    w2_c = w2.astype(matmul_dtype)
    b1_2d = b1.reshape(1, F).astype(jnp.float32)
    b2_2d = b2.reshape(1, D).astype(jnp.float32)
    gamma_2d = gamma.reshape(1, D).astype(jnp.float32)
    beta_2d = beta.reshape(1, D).astype(jnp.float32)

    grid = (rows_padded // tr,)
    w_itemsize = jnp.dtype(matmul_dtype).itemsize

    out2d = pl.pallas_call(
        ffn_kernel,
        out_shape=jax.ShapeDtypeStruct((rows_padded, D), x.dtype),
        grid_spec=pltpu.PrefetchScalarGridSpec(
            num_scalar_prefetch=0,
            grid=grid,
            in_specs=[
                pl.BlockSpec((tr, D), lambda i: (i, 0)),   # x rows tile
                pl.BlockSpec((D, F), lambda i: (0, 0)),    # w1 (grid-invariant)
                pl.BlockSpec((1, F), lambda i: (0, 0)),    # b1
                pl.BlockSpec((F, D), lambda i: (0, 0)),    # w2 (grid-invariant)
                pl.BlockSpec((1, D), lambda i: (0, 0)),    # b2
                pl.BlockSpec((1, D), lambda i: (0, 0)),    # gamma
                pl.BlockSpec((1, D), lambda i: (0, 0)),    # beta
            ],
            out_specs=pl.BlockSpec((tr, D), lambda i: (i, 0)),
        ),
        compiler_params=pltpu.CompilerParams(
            dimension_semantics=("parallel",),
            vmem_limit_bytes=_vmem_limit_bytes(tr, D, F, w_itemsize),
        ),
    )(x2d, w1_c, b1_2d, w2_c, b2_2d, gamma_2d, beta_2d)

    return out2d[:rows].reshape(B, S, D)


def reference_ffn(x, w1, b1, w2, b2, gamma, beta):
    """Plain-JAX f32 reference matching the PyTorch module."""
    h = jnp.maximum(jnp.einsum("bsd,df->bsf", x, w1) + b1, 0.0)
    y = jnp.einsum("bsf,fd->bsd", h, w2) + b2
    r = x + y
    mean = jnp.mean(r, axis=-1, keepdims=True)
    var = jnp.mean((r - mean) ** 2, axis=-1, keepdims=True)
    return (r - mean) * jax.lax.rsqrt(var + LN_EPS) * gamma + beta


if __name__ == "__main__":
    # Small shapes consistent with the module (model_dim=512, ffn_dim=2048 in
    # the original; scaled down here).
    B, S, MODEL_DIM, FFN_DIM = 2, 8, 128, 256

    key = jax.random.PRNGKey(0)
    kx, kw1, kb1, kw2, kb2 = jax.random.split(key, 5)

    x = jax.random.normal(kx, (B, S, MODEL_DIM), dtype=jnp.float32)

    # Conv1d kernel-size-1 weights stored as (in, out) for x @ W; biases as
    # vectors. LayerNorm gamma=1, beta=0.
    w1 = jax.random.normal(kw1, (MODEL_DIM, FFN_DIM), dtype=jnp.float32) * 0.05
    b1 = jax.random.normal(kb1, (FFN_DIM,), dtype=jnp.float32) * 0.05
    w2 = jax.random.normal(kw2, (FFN_DIM, MODEL_DIM), dtype=jnp.float32) * 0.05
    b2 = jax.random.normal(kb2, (MODEL_DIM,), dtype=jnp.float32) * 0.05
    gamma = jnp.ones((MODEL_DIM,), dtype=jnp.float32)
    beta = jnp.zeros((MODEL_DIM,), dtype=jnp.float32)

    ref = reference_ffn(x, w1, b1, w2, b2, gamma, beta)

    # 1) f32-matmul path: must match the f32 reference tightly.
    out_f32 = positionwise_ffn(x, w1, b1, w2, b2, gamma, beta,
                               matmul_dtype=jnp.float32)
    out_f32 = jax.block_until_ready(out_f32)
    assert out_f32.shape == (B, S, MODEL_DIM)
    assert jnp.allclose(out_f32, ref, atol=1e-4, rtol=1e-4), \
        "f32 path mismatch vs reference"

    # 2) Optimized bf16-matmul path (default): relaxed tolerance vs f32 ref.
    out_bf16 = positionwise_ffn(x, w1, b1, w2, b2, gamma, beta)
    out_bf16 = jax.block_until_ready(out_bf16)
    assert out_bf16.shape == (B, S, MODEL_DIM)
    assert jnp.allclose(out_bf16, ref, atol=3e-2, rtol=3e-2), \
        "bf16 path mismatch vs reference"

    # 3) Row count not divisible by 8/tile: exercises the padding path.
    B2, S2 = 3, 5  # rows = 15
    x2 = jax.random.normal(jax.random.PRNGKey(1), (B2, S2, MODEL_DIM),
                           dtype=jnp.float32)
    ref2 = reference_ffn(x2, w1, b1, w2, b2, gamma, beta)
    out2 = positionwise_ffn(x2, w1, b1, w2, b2, gamma, beta,
                            tile_rows=8, matmul_dtype=jnp.float32)
    out2 = jax.block_until_ready(out2)
    assert out2.shape == (B2, S2, MODEL_DIM)
    assert jnp.allclose(out2, ref2, atol=1e-4, rtol=1e-4), \
        "padded-rows path mismatch vs reference"

    # TODO(synk): dropout is p=0.0 in the module (identity); training-mode
    # stochastic dropout is not implemented.
    print("KERNEL_OK")
</pallas_src>

<mosaic_0001>
module attributes {stable_mosaic.version = 11 : i64} {
  func.func @ffn_kernel(%arg0: i32, %arg1: memref<16x128xf32, #tpu.memory_space<vmem>>, %arg2: memref<128x256xf32, #tpu.memory_space<vmem>>, %arg3: memref<1x256xf32, #tpu.memory_space<vmem>>, %arg4: memref<256x128xf32, #tpu.memory_space<vmem>>, %arg5: memref<1x128xf32, #tpu.memory_space<vmem>>, %arg6: memref<1x128xf32, #tpu.memory_space<vmem>>, %arg7: memref<1x128xf32, #tpu.memory_space<vmem>>, %arg8: memref<16x128xf32, #tpu.memory_space<vmem>>) attributes {dimension_semantics = [#tpu.dimension_semantics<parallel>], iteration_bounds = array<i64: 1>, scalar_prefetch = 0 : i64, scratch_operands = 0 : i64, tpu.core_type = #tpu.core_type<tc>, window_params = [{transform_indices = @transform_0, window_bounds = array<i64: 16, 128>}, {pipeline_mode = #tpu.pipeline_mode<synchronous>, transform_indices = @transform_1, window_bounds = array<i64: 128, 256>}, {pipeline_mode = #tpu.pipeline_mode<synchronous>, transform_indices = @transform_2, window_bounds = array<i64: 1, 256>}, {pipeline_mode = #tpu.pipeline_mode<synchronous>, transform_indices = @transform_3, window_bounds = array<i64: 256, 128>}, {pipeline_mode = #tpu.pipeline_mode<synchronous>, transform_indices = @transform_4, window_bounds = array<i64: 1, 128>}, {pipeline_mode = #tpu.pipeline_mode<synchronous>, transform_indices = @transform_5, window_bounds = array<i64: 1, 128>}, {pipeline_mode = #tpu.pipeline_mode<synchronous>, transform_indices = @transform_6, window_bounds = array<i64: 1, 128>}, {transform_indices = @transform_7, window_bounds = array<i64: 16, 128>}]} {
    %c0 = arith.constant 0 : index
    %c0_0 = arith.constant 0 : index
    %0 = vector.load %arg1[%c0, %c0_0] : memref<16x128xf32, #tpu.memory_space<vmem>>, vector<16x128xf32>
    %c0_1 = arith.constant 0 : index
    %c0_2 = arith.constant 0 : index
    %1 = vector.load %arg2[%c0_1, %c0_2] : memref<128x256xf32, #tpu.memory_space<vmem>>, vector<128x256xf32>
    %cst = arith.constant dense<0.000000e+00> : vector<16x256xf32>
    %2 = tpu.matmul %0, %1, %cst {dimension_numbers = #tpu.dot_dimension_numbers<[1], [0], [0], [1], [0, 0, 1, 1], [], []>} : vector<16x128xf32>, vector<128x256xf32>, vector<16x256xf32> -> vector<16x256xf32>
    %c0_3 = arith.constant 0 : index
    %c0_4 = arith.constant 0 : index
    %3 = vector.load %arg3[%c0_3, %c0_4] : memref<1x256xf32, #tpu.memory_space<vmem>>, vector<1x256xf32>
    %4 = vector.broadcast %3 : vector<1x256xf32> to vector<16x256xf32>
    %5 = arith.addf %2, %4 : vector<16x256xf32>
    %cst_5 = arith.constant 0.000000e+00 : f32
    %6 = vector.broadcast %cst_5 : f32 to vector<16x256xf32>
    %7 = arith.maximumf %5, %6 : vector<16x256xf32>
    %c0_6 = arith.constant 0 : index
    %c0_7 = arith.constant 0 : index
    %8 = vector.load %arg4[%c0_6, %c0_7] : memref<256x128xf32, #tpu.memory_space<vmem>>, vector<256x128xf32>
    %cst_8 = arith.constant dense<0.000000e+00> : vector<16x128xf32>
    %9 = tpu.matmul %7, %8, %cst_8 {dimension_numbers = #tpu.dot_dimension_numbers<[1], [0], [0], [1], [0, 0, 1, 1], [], []>} : vector<16x256xf32>, vector<256x128xf32>, vector<16x128xf32> -> vector<16x128xf32>
    %c0_9 = arith.constant 0 : index
    %c0_10 = arith.constant 0 : index
    %10 = vector.load %arg5[%c0_9, %c0_10] : memref<1x128xf32, #tpu.memory_space<vmem>>, vector<1x128xf32>
    %11 = vector.broadcast %10 : vector<1x128xf32> to vector<16x128xf32>
    %12 = arith.addf %9, %11 : vector<16x128xf32>
    %13 = arith.addf %0, %12 : vector<16x128xf32>
    %cst_11 = arith.constant dense<0.000000e+00> : vector<16xf32>
    %14 = vector.multi_reduction <add>, %13, %cst_11 [1] : vector<16x128xf32> to vector<16xf32>
    %15 = vector.shape_cast %14 : vector<16xf32> to vector<16x1xf32>
    %cst_12 = arith.constant 1.280000e+02 : f32
    %16 = vector.broadcast %cst_12 : f32 to vector<16x1xf32>
    %17 = arith.divf %15, %16 : vector<16x1xf32>
    %18 = vector.broadcast %17 : vector<16x1xf32> to vector<16x128xf32>
    %19 = arith.subf %13, %18 : vector<16x128xf32>
    %20 = arith.mulf %19, %19 : vector<16x128xf32>
    %cst_13 = arith.constant dense<0.000000e+00> : vector<16xf32>
    %21 = vector.multi_reduction <add>, %20, %cst_13 [1] : vector<16x128xf32> to vector<16xf32>
    %22 = vector.shape_cast %21 : vector<16xf32> to vector<16x1xf32>
    %cst_14 = arith.constant 1.280000e+02 : f32
    %23 = vector.broadcast %cst_14 : f32 to vector<16x1xf32>
    %24 = arith.divf %22, %23 : vector<16x1xf32>
    %cst_15 = arith.constant 9.99999974E-6 : f32
    %25 = vector.broadcast %cst_15 : f32 to vector<16x1xf32>
    %26 = arith.addf %24, %25 : vector<16x1xf32>
    %27 = math.rsqrt %26 : vector<16x1xf32>
    %28 = vector.broadcast %27 : vector<16x1xf32> to vector<16x128xf32>
    %29 = arith.mulf %19, %28 : vector<16x128xf32>
    %c0_16 = arith.constant 0 : index
    %c0_17 = arith.constant 0 : index
    %30 = vector.load %arg6[%c0_16, %c0_17] : memref<1x128xf32, #tpu.memory_space<vmem>>, vector<1x128xf32>
    %31 = vector.broadcast %30 : vector<1x128xf32> to vector<16x128xf32>
    %32 = arith.mulf %29, %31 : vector<16x128xf32>
    %c0_18 = arith.constant 0 : index
    %c0_19 = arith.constant 0 : index
    %33 = vector.load %arg7[%c0_18, %c0_19] : memref<1x128xf32, #tpu.memory_space<vmem>>, vector<1x128xf32>
    %34 = vector.broadcast %33 : vector<1x128xf32> to vector<16x128xf32>
    %35 = arith.addf %32, %34 : vector<16x128xf32>
    %c0_20 = arith.constant 0 : index
    %c0_21 = arith.constant 0 : index
    %36 = vector.load %arg8[%c0_20, %c0_21] : memref<16x128xf32, #tpu.memory_space<vmem>>, vector<16x128xf32>
    tpu.vector_store %arg8[%c0_20, %c0_21], %35 {strides = array<i32>} : memref<16x128xf32, #tpu.memory_space<vmem>>, vector<16x128xf32>,
    return
  }
  func.func @transform_0(%arg0: i32) -> (i32, i32) {
    %c0_i32 = arith.constant 0 : i32
    %c0_i32_0 = arith.constant 0 : i32
    return %arg0, %c0_i32 : i32, i32
  }
  func.func @transform_1(%arg0: i32) -> (i32, i32) {
    %c0_i32 = arith.constant 0 : i32
    %c0_i32_0 = arith.constant 0 : i32
    %c0_i32_1 = arith.constant 0 : i32
    return %c0_i32, %c0_i32_0 : i32, i32
  }
  func.func @transform_2(%arg0: i32) -> (i32, i32) {
    %c0_i32 = arith.constant 0 : i32
    %c0_i32_0 = arith.constant 0 : i32
    %c0_i32_1 = arith.constant 0 : i32
    return %c0_i32, %c0_i32_0 : i32, i32
  }
  func.func @transform_3(%arg0: i32) -> (i32, i32) {
    %c0_i32 = arith.constant 0 : i32
    %c0_i32_0 = arith.constant 0 : i32
    %c0_i32_1 = arith.constant 0 : i32
    return %c0_i32, %c0_i32_0 : i32, i32
  }
  func.func @transform_4(%arg0: i32) -> (i32, i32) {
    %c0_i32 = arith.constant 0 : i32
    %c0_i32_0 = arith.constant 0 : i32
    %c0_i32_1 = arith.constant 0 : i32
    return %c0_i32, %c0_i32_0 : i32, i32
  }
  func.func @transform_5(%arg0: i32) -> (i32, i32) {
    %c0_i32 = arith.constant 0 : i32
    %c0_i32_0 = arith.constant 0 : i32
    %c0_i32_1 = arith.constant 0 : i32
    return %c0_i32, %c0_i32_0 : i32, i32
  }
  func.func @transform_6(%arg0: i32) -> (i32, i32) {
    %c0_i32 = arith.constant 0 : i32
    %c0_i32_0 = arith.constant 0 : i32
    %c0_i32_1 = arith.constant 0 : i32
    return %c0_i32, %c0_i32_0 : i32, i32
  }
  func.func @transform_7(%arg0: i32) -> (i32, i32) {
    %c0_i32 = arith.constant 0 : i32
    %c0_i32_0 = arith.constant 0 : i32
    return %arg0, %c0_i32 : i32, i32
  }
}

</mosaic_0001>

<bundles_post_ra>
// kernel: positionwise_ffn.1
= control target key start
LH: loop header
LB: loop body
LE: loop exit
PB: predicated region body
PF: predicated region fallthrough
CT: control target
= control target key end

     0   :  { %12 = vsyncpa [#allocation3], 0  ;;  %s658_s0 = inlined_call_operand.vmem [shape: f32[16,128], index: 0, kind: input, shape index: {}]   ;;  %s659_s1 = inlined_call_operand.hbm [shape: f32[128,256], index: 1, kind: input, shape index: {}]   ;;  %s660_s2 = inlined_call_operand.vmem [shape: f32[1,256], index: 2, kind: input, shape index: {}]   ;;  %s661_s3 = inlined_call_operand.hbm [shape: f32[256,128], index: 3, kind: input, shape index: {}]   ;;  %s662_s4 = inlined_call_operand.vmem [shape: f32[1,128], index: 4, kind: input, shape index: {}]   ;;  %s663_s5 = inlined_call_operand.vmem [shape: f32[1,128], index: 5, kind: input, shape index: {}]   ;;  %s664_s6 = inlined_call_operand.vmem [shape: f32[1,128], index: 6, kind: input, shape index: {}]   ;;  %s665_s7 = inlined_call_operand.hbm [shape: f32[16,128], index: 7, kind: output, shape index: {}]  }
   0x1   :  { %13 = vsyncpa [#allocation6], 0 }
   0x2   :  { %14 = vsyncpa [#allocation4], 0  ;;  %s548_s24 = smov [#allocation2]   ;;  %s476_s28 = scalar_lea.hbm %s659_s1, 4096 }
   0x3   :  { %s22_s25 = sshll.u32 %s548_s24, 4  ;;  %p477_p0 = scmp.ne.s32.totalorder %s659_s1, %s476_s28  ;;  %s23_s25 = int_to_ptr.vmem [resolvable:$true] %s22_s25 }
   0x4   :  { %p480_p1 = scmp.lt.u32.totalorder %s476_s28, %s659_s1 }
   0x6   :  { %p482_p2 = pnand %p480_p1, %p477_p0 }
   0x8   :  { %485 = shalt.err (!%p482_p2)
}
   0x9   :  { %s486_s10 = scalar_lea.vmem %s23_s25, 4096  ;;  %p491_p4 = scmp.lt.s32.totalorder %s23_s25, %s23_s25 }
   0xa   :  { %p487_p3 = scmp.ne.s32.totalorder %s23_s25, %s486_s10  ;;  %p492_p5 = scmp.lt.s32.totalorder %s486_s10, %s486_s10 }
   0xc   :  { %p493_p6 = por %p492_p5, %p491_p4 }
   0xe   :  { %p494_p7 = pnand %p493_p6, %p487_p3 }
  0x10   :  { %497 = shalt.err (!%p494_p7)
}
  0x11   :  { %s549_s11 = smov 256   ;;  %s550_s12 = smov 16  }
  0x12   :  { %28 = dma.hbm_to_vmem [thread:$0]  %s659_s1, 4096, %s23_s25, [#allocation3], %s549_s11, %s549_s11, %s550_s12  }
  0x13   :  { %s551_s15 = smov [#allocation5]   ;;  %s498_s19 = scalar_lea.hbm %s661_s3, 4096 }
  0x14   :  { %s36_s16 = sshll.u32 %s551_s15, 4  ;;  %p499_p8 = scmp.ne.s32.totalorder %s661_s3, %s498_s19  ;;  %s37_s16 = int_to_ptr.vmem [resolvable:$true] %s36_s16 }
  0x15   :  { %p502_p9 = scmp.lt.u32.totalorder %s498_s19, %s661_s3 }
  0x17   :  { %p504_p10 = pnand %p502_p9, %p499_p8 }
  0x19   :  { %507 = shalt.err (!%p504_p10)
}
  0x1a   :  { %s508_s24 = scalar_lea.vmem %s37_s16, 4096  ;;  %p513_p12 = scmp.lt.s32.totalorder %s37_s16, %s37_s16 }
  0x1b   :  { %p509_p11 = scmp.ne.s32.totalorder %s37_s16, %s508_s24  ;;  %p514_p13 = scmp.lt.s32.totalorder %s508_s24, %s508_s24 }
  0x1d   :  { %p515_p0 = por %p514_p13, %p513_p12 }
  0x1f   :  { %p516_p1 = pnand %p515_p0, %p509_p11 }
  0x21   :  { %519 = shalt.err (!%p516_p1)
}
  0x22   :  { %s552_s1 = smov 128   ;;  %s553_s25 = smov 8  }
  0x23   :  { %42 = dma.hbm_to_vmem [thread:$0]  %s661_s3, 4096, %s37_s16, [#allocation6], %s552_s1, %s552_s1, %s553_s25  }
  0x24   :  { %542 = dma.done.wait [#allocation3], 4096  }
  0x25   :  { %543 = vsyncadd [#allocation3], 4294963200 }
  0x26   :  { %544 = dma.done.wait [#allocation6], 4096  }
  0x27   :  { %545 = vsyncadd [#allocation6], 4294963200  ;;  %v554_v0 = vmov 0.0   ;;  %v58_v1 = vld [vmem:[#allocation2 + $0x8] sm:$0xff]  ;;  %v60_v2 = vld [vmem:[#allocation2 + $0x18] sm:$0xff]  ;;  %s555_s13 = smov [#allocation7]  }
  0x28   :  { %165 = vmatprep.mubr.f32.mxu0 %v554_v0  ;;  %v57_v3 = vld [vmem:[#allocation2] sm:$0xff]  ;;  %v400_v4 = vpack.c.bf16 %v60_v2, %v58_v1  ;;  %v59_v5 = vld [vmem:[#allocation2 + $0x10] sm:$0xff]  ;;  %v62_v6 = vld [vmem:[#allocation2 + $0x28] sm:$0xff]  ;;  %s346_s14 = sshll.u32 %s555_s13, 4  ;;  %s347_s14 = int_to_ptr.vmem [resolvable:$true] %s346_s14 }
  0x29   :  { %v64_v7 = vld [vmem:[#allocation2 + $0x38] sm:$0xff]  ;;  %v402_v8 = vpack.c.bf16 %v59_v5, %v57_v3  ;;  %v61_v10 = vld [vmem:[#allocation2 + $0x20] sm:$0xff]  ;;  %v63_v11 = vld [vmem:[#allocation2 + $0x30] sm:$0xff]  ;;  %s520_s15 = scalar_lea.vmem %s347_s14, 256  ;;  %p525_p3 = scmp.lt.s32.totalorder %s347_s14, %s347_s14 }
  0x2a   :  { %v404_v9 = vpack.c.bf16 %v64_v7, %v62_v6  ;;  %v66_v12 = vld [vmem:[#allocation2 + $0x48] sm:$0xff]  ;;  %401 = vmatprep.subr.bf16.mxu0 %v400_v4  ;;  %v68_v13 = vld [vmem:[#allocation2 + $0x58] sm:$0xff]  ;;  %v406_v14 = vpack.c.bf16 %v63_v11, %v61_v10  ;;  %v65_v16 = vld [vmem:[#allocation2 + $0x40] sm:$0xff]  ;;  %p521_p2 = scmp.ne.s32.totalorder %s347_s14, %s520_s15  ;;  %p526_p4 = scmp.lt.s32.totalorder %s520_s15, %s520_s15 }
  0x2b   :  { %403 = vmatpush1.bf16.msra.mxu0 %v402_v8  ;;  %v408_v15 = vpack.c.bf16 %v68_v13, %v66_v12  ;;  %v67_v17 = vld [vmem:[#allocation2 + $0x50] sm:$0xff]  ;;  %v70_v18 = vld [vmem:[#allocation2 + $0x68] sm:$0xff]  ;;  %v72_v19 = vld [vmem:[#allocation2 + $0x78] sm:$0xff] }
  0x2c   :  { %405 = vmatprep.subr.bf16.mxu0 %v404_v9  ;;  %v410_v20 = vpack.c.bf16 %v67_v17, %v65_v16  ;;  %v412_v21 = vpack.c.bf16 %v72_v19, %v70_v18  ;;  %v69_v22 = vld [vmem:[#allocation2 + $0x60] sm:$0xff]  ;;  %v71_v23 = vld [vmem:[#allocation2 + $0x70] sm:$0xff]  ;;  %v74_v24 = vld [vmem:[#allocation2 + $0x88] sm:$0xff]  ;;  %p527_p5 = por %p526_p4, %p525_p3 }
  0x2d   :  { %v76_v25 = vld [vmem:[#allocation2 + $0x98] sm:$0xff]  ;;  %v73_v26 = vld [vmem:[#allocation2 + $0x80] sm:$0xff]  ;;  %v75_v27 = vld [vmem:[#allocation2 + $0x90] sm:$0xff]  ;;  %v414_v30 = vpack.c.bf16 %v71_v23, %v69_v22 }
  0x2e   :  { %v198_v28 = vld [vmem:[#allocation5 + $0x80] sm:$0xff]  ;;  %v199_v29 = vld [vmem:[#allocation5 + $0x88] sm:$0xff]  ;;  %v200_v35 = vld [vmem:[#allocation5 + $0x90] sm:$0xff]  ;;  %v416_v36 = vpack.c.bf16 %v76_v25, %v74_v24  ;;  %v418_v46 = vpack.c.bf16 %v75_v27, %v73_v26  ;;  %p528_p6 = pnand %p527_p5, %p521_p2 }
  0x2f   :  { %407 = vmatpush1.bf16.msra.mxu0 %v406_v14  ;;  %v78_v31 = vld [vmem:[#allocation2 + $0xa8] sm:$0xff]  ;;  %v432_v32 = vpack.c.bf16 %v199_v29, %v198_v28  ;;  %v182_v33 = vld [vmem:[#allocation5] sm:$0xff]  ;;  %v201_v38 = vld [vmem:[#allocation5 + $0x98] sm:$0xff] }
  0x30   :  { %409 = vmatprep.subr.bf16.mxu0 %v408_v15  ;;  %v183_v34 = vld [vmem:[#allocation5 + $0x8] sm:$0xff]  ;;  %v184_v39 = vld [vmem:[#allocation5 + $0x10] sm:$0xff]  ;;  %v185_v40 = vld [vmem:[#allocation5 + $0x18] sm:$0xff]  ;;  %v436_v42 = vpack.c.bf16 %v201_v38, %v200_v35 }
  0x31   :  { %v434_v37 = vpack.c.bf16 %v183_v34, %v182_v33  ;;  %v80_v41 = vld [vmem:[#allocation2 + $0xb8] sm:$0xff]  ;;  %433 = vmatprep.subr.bf16.mxu1 %v432_v32  ;;  %v202_v43 = vld [vmem:[#allocation5 + $0xa0] sm:$0xff]  ;;  %v203_v44 = vld [vmem:[#allocation5 + $0xa8] sm:$0xff]  ;;  %v438_v45 = vpack.c.bf16 %v185_v40, %v184_v39 }
  0x32   :  { %v77_v47 = vld [vmem:[#allocation2 + $0xa0] sm:$0xff]  ;;  %v440_v48 = vpack.c.bf16 %v203_v44, %v202_v43  ;;  %v187_v50 = vld [vmem:[#allocation5 + $0x28] sm:$0xff]  ;;  %v420_v51 = vpack.c.bf16 %v80_v41, %v78_v31  ;;  %v79_v52 = vld [vmem:[#allocation2 + $0xb0] sm:$0xff] }
  0x33   :  { %411 = vmatpush1.bf16.msra.mxu0 %v410_v20  ;;  %435 = vmatpush3.bf16.msra.mxu1 %v434_v37  ;;  %v186_v49 = vld [vmem:[#allocation5 + $0x20] sm:$0xff]  ;;  %v204_v53 = vld [vmem:[#allocation5 + $0xb0] sm:$0xff]  ;;  %v205_v54 = vld [vmem:[#allocation5 + $0xb8] sm:$0xff]  ;;  %v422_v58 = vpack.c.bf16 %v79_v52, %v77_v47 }
  0x34   :  { %413 = vmatprep.subr.bf16.mxu0 %v412_v21  ;;  %437 = vmatprep.subr.bf16.mxu1 %v436_v42  ;;  %v82_v55 = vld [vmem:[#allocation2 + $0xc8] sm:$0xff]  ;;  %v84_v56 = vld [vmem:[#allocation2 + $0xd8] sm:$0xff]  ;;  %v442_v57 = vpack.c.bf16 %v187_v50, %v186_v49  ;;  %v81_v59 = vld [vmem:[#allocation2 + $0xc0] sm:$0xff]  ;;  %v444_v60 = vpack.c.bf16 %v205_v54, %v204_v53 }
  0x35   :  { %v188_v61 = vld [vmem:[#allocation5 + $0x30] sm:$0xff]  ;;  %v189_v62 = vld [vmem:[#allocation5 + $0x38] sm:$0xff]  ;;  %v424_v63 = vpack.c.bf16 %v84_v56, %v82_v55  ;;  %v206_v2 = vld [vmem:[#allocation5 + $0xc0] sm:$0xff] }
  0x36   :  { %v83_v1 = vld [vmem:[#allocation2 + $0xd0] sm:$0xff]  ;;  %v207_v3 = vld [vmem:[#allocation5 + $0xc8] sm:$0xff]  ;;  %v88_v5 = vld [vmem:[#allocation2 + $0xf8] sm:$0xff]  ;;  %v446_v6 = vpack.c.bf16 %v189_v62, %v188_v61 }
  0x37   :  { %415 = vmatpush1.bf16.msra.mxu0 %v414_v30  ;;  %439 = vmatpush3.bf16.msra.mxu1 %v438_v45  ;;  %v86_v4 = vld [vmem:[#allocation2 + $0xe8] sm:$0xff]  ;;  %v426_v7 = vpack.c.bf16 %v83_v1, %v81_v59  ;;  %v85_v8 = vld [vmem:[#allocation2 + $0xe0] sm:$0xff]  ;;  %v448_v9 = vpack.c.bf16 %v207_v3, %v206_v2  ;;  %v87_v13 = vld [vmem:[#allocation2 + $0xf0] sm:$0xff] }
  0x38   :  { %417 = vmatprep.subr.bf16.mxu0 %v416_v36  ;;  %441 = vmatprep.subr.bf16.mxu1 %v440_v48  ;;  %v190_v10 = vld [vmem:[#allocation5 + $0x40] sm:$0xff]  ;;  %v191_v11 = vld [vmem:[#allocation5 + $0x48] sm:$0xff]  ;;  %v428_v12 = vpack.c.bf16 %v88_v5, %v86_v4  ;;  %v208_v14 = vld [vmem:[#allocation5 + $0xd0] sm:$0xff]  ;;  %v430_v17 = vpack.c.bf16 %v87_v13, %v85_v8  ;;  %v91_v36 = vlaneseq }
  0x39   :  { %v209_v15 = vld [vmem:[#allocation5 + $0xd8] sm:$0xff]  ;;  %v450_v16 = vpack.c.bf16 %v191_v11, %v190_v10  ;;  %v192_v19 = vld [vmem:[#allocation5 + $0x50] sm:$0xff]  ;;  %v210_v21 = vld [vmem:[#allocation5 + $0xe0] sm:$0xff] }
  0x3a   :  { %v452_v18 = vpack.c.bf16 %v209_v15, %v208_v14  ;;  %v193_v20 = vld [vmem:[#allocation5 + $0x58] sm:$0xff]  ;;  %v211_v22 = vld [vmem:[#allocation5 + $0xe8] sm:$0xff]  ;;  %v55_v24 = vld [vmem:[%s658_s0] sm:$0xff] }
  0x3b   :  { %419 = vmatpush1.bf16.msra.mxu0 %v418_v46  ;;  %443 = vmatpush3.bf16.msra.mxu1 %v442_v57  ;;  %v454_v23 = vpack.c.bf16 %v193_v20, %v192_v19  ;;  %v456_v25 = vpack.c.bf16 %v211_v22, %v210_v21  ;;  %v56_v26 = vld [vmem:[%s658_s0 + $0x8] sm:$0xff]  ;;  %v194_v27 = vld [vmem:[#allocation5 + $0x60] sm:$0xff]  ;;  %v212_v30 = vld [vmem:[#allocation5 + $0xf0] sm:$0xff] }
  0x3c   :  { %421 = vmatprep.subr.bf16.mxu0 %v420_v51  ;;  %445 = vmatprep.subr.bf16.mxu1 %v444_v60  ;;  %v195_v28 = vld [vmem:[#allocation5 + $0x68] sm:$0xff]  ;;  %v213_v31 = vld [vmem:[#allocation5 + $0xf8] sm:$0xff]  ;;  %v196_v33 = vld [vmem:[#allocation5 + $0x70] sm:$0xff] }
  0x3d   :  { %v458_v29 = vpack.c.bf16 %v195_v28, %v194_v27  ;;  %v460_v32 = vpack.c.bf16 %v213_v31, %v212_v30  ;;  %v197_v34 = vld [vmem:[#allocation5 + $0x78] sm:$0xff]  ;;  %v89_v38 = vld [vmem:[%s660_s2] sm:$0x3] }
  0x3e   :  { %v462_v35 = vpack.c.bf16 %v197_v34, %v196_v33  ;;  %v359_v55 = vld [vmem:[%s662_s4] ss:$0 sm:$0xff] }
  0x3f   :  { %423 = vmatpush1.bf16.msra.mxu0 %v422_v58  ;;  %447 = vmatpush3.bf16.msra.mxu1 %v446_v6  ;;  %v361_v19 = vld [vmem:[%s664_s6] ss:$0 sm:$0xff] }
  0x40   :  { %425 = vmatprep.subr.bf16.mxu0 %v424_v63  ;;  %449 = vmatprep.subr.bf16.mxu1 %v448_v9 }
  0x43   :  { %427 = vmatpush1.bf16.msra.mxu0 %v426_v7  ;;  %451 = vmatpush3.bf16.msra.mxu1 %v450_v16 }
  0x44   :  { %429 = vmatprep.subr.bf16.mxu0 %v428_v12  ;;  %453 = vmatprep.subr.bf16.mxu1 %v452_v18 }
  0x47   :  { %431 = vmatpush1.bf16.msra.mxu0 %v430_v17  ;;  %455 = vmatpush3.bf16.msra.mxu1 %v454_v23  ;;  %v360_v17 = vld [vmem:[%s663_s5] ss:$0 sm:$0xff] }
  0x48   :  { %457 = vmatprep.subr.bf16.mxu1 %v456_v25 }
  0x4a   :  { %166 = vmatmul.mubr.f32.vlgmr.msra.gmra.mrb[0].mxu0 %v55_v24 }
  0x4b   :  { %171 = vmatprep.mubr.f32.mxu0 %v554_v0  ;;  %459 = vmatpush3.bf16.msra.mxu1 %v458_v29  ;;  %v92_v0 = vshrl.u32 %v91_v36, 7 }
  0x4c   :  { %461 = vmatprep.subr.bf16.mxu1 %v460_v32 }
  0x4d   :  { %v93_v37 = vsub.s32 0, %v92_v0  ;;  %v97_v39 = vsub.s32 1, %v92_v0 }
  0x4e   :  { %172 = vmatmul.mubr.f32.gmra.mrb[2].mxu0 %v56_v26 }
  0x4f   :  { %463 = vmatpush3.bf16.msra.mxu1 %v462_v35  ;;  %v94_v40 = vrot.slane %v89_v38, %v93_v37  ;;  %v98_v41 = vrot.slane %v89_v38, %v97_v39 }
 0x11d   :  { %v167_v42 = vpop.f32.mrb[0].mxu0 }
 0x11e   :  { %v168_v43 = vadd.f32 %v167_v42, %v94_v40  ;;  %v169_v44 = vpop.f32.mrb[1].mxu0 }
 0x11f   :  { %v170_v45 = vadd.f32 %v169_v44, %v98_v41 }
 0x120   :  { %v178_v48 = vmax.f32 %v168_v43, 0.0 }
 0x121   :  { %v173_v46 = vpop.f32.mrb[2].mxu0  ;;  %v179_v47 = vmax.f32 %v170_v45, 0.0 }
 0x122   :  { %v174_v49 = vadd.f32 %v173_v46, %v94_v40  ;;  %v175_v50 = vpop.f32.mrb[3].mxu0 }
 0x123   :  { %v176_v51 = vadd.f32 %v175_v50, %v98_v41  ;;  %285 = vmatprep.mubr.f32.mxu1 %v179_v47 }
 0x124   :  { %286 = vmatmul.mubr.f32.vlgmr.msra.gmra.mrb[0].mxu1 %v178_v48  ;;  %v180_v53 = vmax.f32 %v174_v49, 0.0 }
 0x125   :  { %v181_v52 = vmax.f32 %v176_v51, 0.0 }
 0x127   :  { %290 = vmatprep.mubr.f32.mxu1 %v181_v52 }
 0x128   :  { %291 = vmatmul.mubr.f32.gmra.mrb[2].mxu1 %v180_v53 }
 0x1f7   :  { %v394_v54 = vpop.f32.mrb[0].mxu1 }
 0x1f8   :  { %v395_v56 = vpop.f32.mrb[1].mxu1 }
 0x1f9   :  { %v396_v57 = vadd.f32 %v395_v56, %v394_v54 }
 0x1fb   :  { %v288_v58 = vadd.f32 %v396_v57, %v359_v55  ;;  %v397_v59 = vpop.f32.mrb[2].mxu1 }
 0x1fc   :  { %v398_v60 = vpop.f32.mrb[3].mxu1 }
 0x1fd   :  { %v399_v61 = vadd.f32 %v398_v60, %v397_v59  ;;  %v296_v62 = vadd.f32 %v288_v58, %v55_v24 }
 0x1ff   :  { %v293_v63 = vadd.f32 %v399_v61, %v359_v55  ;;  %298 = vadd.xlane.f32.xlu0 %v296_v62 }
 0x201   :  { %v297_v1 = vadd.f32 %v293_v63, %v56_v26 }
 0x203   :  { %300 = vadd.xlane.f32.xlu0 %v297_v1 }
 0x28c   :  { %v299_v2 = vpop.xlane.xlu0 %298 }
 0x28d   :  { %v303_v3 = vmul.f32 0.0078125, %v299_v2 }
 0x28f   :  { %v305_v4 = vsub.f32 %v296_v62, %v303_v3 }
 0x290   :  { %v301_v5 = vpop.xlane.xlu0 %300 }
 0x291   :  { %v304_v6 = vmul.f32 0.0078125, %v301_v5  ;;  %v307_v7 = vmul.f32 %v305_v4, %v305_v4 }
 0x293   :  { %v306_v8 = vsub.f32 %v297_v1, %v304_v6  ;;  %309 = vadd.xlane.f32.xlu1 %v307_v7 }
 0x295   :  { %v308_v9 = vmul.f32 %v306_v8, %v306_v8 }
 0x297   :  { %311 = vadd.xlane.f32.xlu1 %v308_v9 }
 0x320   :  { %v310_v10 = vpop.xlane.xlu1 %309 }
 0x321   :  { %v313_v11 = vmul.f32 0.0078125, %v310_v10 }
 0x323   :  { %v315_v12 = vadd.f32 1e-05, %v313_v11 }
 0x324   :  { %v312_v13 = vpop.xlane.xlu1 %311 }
 0x325   :  { %472 = vrsqrt.f32 %v315_v12  ;;  %v314_v14 = vmul.f32 0.0078125, %v312_v13 }
 0x327   :  { %v316_v15 = vadd.f32 1e-05, %v314_v14 }
 0x329   :  { %474 = vrsqrt.f32 %v316_v15 }
 0x32f   :  { %v473_v16 = vpop.eup %472 }
 0x330   :  { %v319_v18 = vmul.f32 %v473_v16, %v305_v4 }
 0x332   :  { %v328_v20 = vmul.f32 %v360_v17, %v319_v18 }
 0x333   :  { %v475_v21 = vpop.eup %474 }
 0x334   :  { %v320_v22 = vmul.f32 %v475_v21, %v306_v8  ;;  %v337_v23 = vadd.f32 %v361_v19, %v328_v20 }
 0x336   :  { %v329_v24 = vmul.f32 %v360_v17, %v320_v22  ;;  %339 = vst [vmem:[#allocation7] sm:$0xff] %v337_v23 }
 0x338   :  { %v338_v25 = vadd.f32 %v361_v19, %v329_v24 }
 0x33a   :  { %340 = vst [vmem:[#allocation7 + $0x8] sm:$0xff] %v338_v25 }
 0x33b   :  { %531 = shalt.err (!%p528_p6)
}
 0x33c   :  { %s532_s16 = scalar_lea.hbm %s665_s7, 256 }
 0x33d   :  { %p533_p7 = scmp.ne.s32.totalorder %s665_s7, %s532_s16  ;;  %p536_p8 = scmp.lt.u32.totalorder %s532_s16, %s665_s7 }
 0x33f   :  { %p538_p9 = pnand %p536_p8, %p533_p7 }
 0x341   :  { %541 = shalt.err (!%p538_p9)
}
 0x342   :  { %352 = dma.vmem_to_hbm [thread:$0]  %s347_s14, 256, %s665_s7, [#allocation4], %s552_s1, %s552_s1, %s553_s25  }
 0x343   :  { %546 = dma.done.wait [#allocation4], 256  }
 0x344   :  { %547 = vsyncadd [#allocation4], 4294967040 }
 0x345   :  { %356 = vsyncpa [#allocation3], 1 }
 0x346   :  { %357 = vsyncpa [#allocation6], 1 }
 0x347   :  { %358 = vsyncpa [#allocation4], 1 }

</bundles_post_ra>
